<compile_context>
chip_gen: v5e
topology: v5e:2x2
jax: 0.10.0
libtpu: 0.0.40
codegen_flags: <defaults>
</compile_context>

<pallas_src>
import jax
import jax.numpy as jnp
import numpy as np
from jax.experimental import pallas as pl
from jax.experimental.pallas import tpu as pltpu


def _make_lightconv_kernel(C1, C2, N, H, W, k, eps=1e-5):
    M = N * H * W
    p = k // 2
    kk = k * k
    inv_m = 1.0 / M
    # Packed-parameter column indices.
    G1, B1, G2, B2 = C1 + kk, C1 + kk + 1, C1 + kk + 2, C1 + kk + 3

    def kernel(x_ref, p_ref, o_ref):
        xv = x_ref[...]                                   # (C1+1, M) f32
        pv = p_ref[...]                                   # (C2, C1+kk+4) f32
        # Tap-validity bit codes ride as the last activation row (exact ints).
        bits = xv[C1:C1 + 1, :].astype(jnp.int32)         # (1, M) int32

        # ---- conv1: 1x1 pointwise (bias=False) as C1 VPU broadcast-MACs ----
        y = pv[:, 0:1] * xv[0:1, :]                       # (C2,1)*(1,M) -> (C2,M)
        for c in range(1, C1):
            y = y + pv[:, c:c + 1] * xv[c:c + 1, :]

        # ---- BN #1 (training-mode batch stats; Conv(act=False) -> Identity) ----
        # One-pass sum / sum-of-squares; gamma folded into the rsqrt scale.
        mean1 = jnp.sum(y, axis=1, keepdims=True) * inv_m
        msq1 = jnp.sum(y * y, axis=1, keepdims=True) * inv_m
        scale1 = jax.lax.rsqrt(msq1 - mean1 * mean1 + eps) * pv[:, G1:G1 + 1]
        y = (y - mean1) * scale1 + pv[:, B1:B1 + 1]

        # ---- conv2: depthwise kxk, stride 1, 'same' zero padding ----
        # Each tap = lane rotation (XLU) of the in-register activation; the
        # per-position validity bit kills wrapped / out-of-image contributions
        # (so wrap-around from the rotate never reaches a valid output).
        acc = None
        for u in range(k):
            for v in range(k):
                t = u * k + v
                sft = (u - p) * W + (v - p)               # flat (n,h,w) offset
                if sft == 0:
                    tap = y
                else:
                    # pltpu.roll follows jnp.roll semantics:
                    # rolled[m] = y[(m - shift) % M]; we need y[(m + sft) % M].
                    tap = pltpu.roll(y, (-sft) % M, axis=1)
                ok = (bits & (1 << t)) != 0               # (1, M) bool
                contrib = pv[:, C1 + t:C1 + t + 1] * jnp.where(ok, tap, 0.0)
                acc = contrib if acc is None else acc + contrib

        # ---- BN #2 + ReLU (DWConv act for LightConv) ----
        mean2 = jnp.sum(acc, axis=1, keepdims=True) * inv_m
        msq2 = jnp.sum(acc * acc, axis=1, keepdims=True) * inv_m
        scale2 = jax.lax.rsqrt(msq2 - mean2 * mean2 + eps) * pv[:, G2:G2 + 1]
        z = (acc - mean2) * scale2 + pv[:, B2:B2 + 1]
        o_ref[...] = jnp.maximum(z, 0.0)                  # lane-dense unmasked store

    return kernel


def _tap_bit_codes(N, H, W, k):
    """(N*H*W,) float32 of exact integers; bit t set iff tap t lands in-image."""
    p = k // 2
    hh = np.arange(H)[:, None]
    ww = np.arange(W)[None, :]
    code = np.zeros((H, W), np.int64)
    for u in range(k):
        for v in range(k):
            du, dv = u - p, v - p
            valid = ((hh + du >= 0) & (hh + du < H) &
                     (ww + dv >= 0) & (ww + dv < W))
            code |= valid.astype(np.int64) << (u * k + v)
    return np.tile(code.reshape(-1), N).astype(np.float32)   # exact for k*k <= 24


def lightconv_forward(x, w1, gamma1, beta1, w2, gamma2, beta2, k, eps=1e-5):
    """x: (N, C1, H, W) f32; w1: (C2, C1, 1, 1); w2: (C2, 1, k, k)."""
    N, C1, H, W = x.shape
    C2 = w1.shape[0]
    assert k % 2 == 1, "same-padding depthwise path assumes odd k (autopad k//2)"
    assert k * k <= 24, "bit codes ride as exact f32 ints; bitcast-pack for larger k"
    M = N * H * W

    # Layout plumbing only: channel-major, batch+spatial flattened onto lanes,
    # tap-validity bit codes appended as one extra activation row (one DMA).
    x_cm = jnp.transpose(x, (1, 0, 2, 3)).reshape(C1, M)          # (C1, M)
    code = jnp.asarray(_tap_bit_codes(N, H, W, k))                # (M,)
    x_in = jnp.concatenate([x_cm, code[None, :]], axis=0)         # (C1+1, M)

    # All per-channel parameters packed into one (C2, C1 + k*k + 4) array.
    params = jnp.concatenate(
        [w1.reshape(C2, C1), w2.reshape(C2, k * k),
         gamma1[:, None], beta1[:, None], gamma2[:, None], beta2[:, None]],
        axis=1).astype(jnp.float32)

    kernel = _make_lightconv_kernel(C1, C2, N, H, W, k, eps)

    out_cm = pl.pallas_call(
        kernel,
        out_shape=jax.ShapeDtypeStruct((C2, M), jnp.float32),
    )(x_in, params)

    # (C2, N*H*W) -> (N, C2, H, W)
    return out_cm.reshape(C2, N, H, W).transpose(1, 0, 2, 3)


if __name__ == "__main__":
    key = jax.random.PRNGKey(0)
    kx, kw1, kw2, kg1, kb1, kg2, kb2 = jax.random.split(key, 7)

    # LightConv(c1=4, c2=8, k=3, act=ReLU) on a (2, 4, 16, 16) input.
    N, C1, C2, H, W, k = 2, 4, 8, 16, 16, 3

    x = jax.random.normal(kx, (N, C1, H, W), dtype=jnp.float32)

    # Conv2d default init: U(-1/sqrt(fan_in), 1/sqrt(fan_in)).
    b1 = 1.0 / np.sqrt(C1 * 1 * 1)
    w1 = jax.random.uniform(kw1, (C2, C1, 1, 1), minval=-b1, maxval=b1,
                            dtype=jnp.float32)
    b2 = 1.0 / np.sqrt(1 * k * k)
    w2 = jax.random.uniform(kw2, (C2, 1, k, k), minval=-b2, maxval=b2,
                            dtype=jnp.float32)

    # BatchNorm2d affine params (non-trivial values to exercise the fused path).
    gamma1 = jax.random.uniform(kg1, (C2,), minval=0.5, maxval=1.5, dtype=jnp.float32)
    beta1 = 0.1 * jax.random.normal(kb1, (C2,), dtype=jnp.float32)
    gamma2 = jax.random.uniform(kg2, (C2,), minval=0.5, maxval=1.5, dtype=jnp.float32)
    beta2 = 0.1 * jax.random.normal(kb2, (C2,), dtype=jnp.float32)

    out = lightconv_forward(x, w1, gamma1, beta1, w2, gamma2, beta2, k)
    out = jax.block_until_ready(out)

    # Pure-JAX reference: conv1x1 -> BN(train) -> depthwise conv -> BN(train) -> ReLU.
    eps = 1e-5
    y1 = jax.lax.conv_general_dilated(
        x, w1, (1, 1), 'VALID', dimension_numbers=('NCHW', 'OIHW', 'NCHW'))
    m1 = y1.mean(axis=(0, 2, 3), keepdims=True)
    v1 = ((y1 - m1) ** 2).mean(axis=(0, 2, 3), keepdims=True)
    y1 = ((y1 - m1) * jax.lax.rsqrt(v1 + eps)
          * gamma1.reshape(1, -1, 1, 1) + beta1.reshape(1, -1, 1, 1))

    p = k // 2
    y2 = jax.lax.conv_general_dilated(
        y1, w2, (1, 1), [(p, p), (p, p)],
        dimension_numbers=('NCHW', 'OIHW', 'NCHW'), feature_group_count=C2)
    m2 = y2.mean(axis=(0, 2, 3), keepdims=True)
    v2 = ((y2 - m2) ** 2).mean(axis=(0, 2, 3), keepdims=True)
    y2 = ((y2 - m2) * jax.lax.rsqrt(v2 + eps)
          * gamma2.reshape(1, -1, 1, 1) + beta2.reshape(1, -1, 1, 1))
    ref = jnp.maximum(y2, 0.0)

    assert out.shape == (N, C2, H, W)
    np.testing.assert_allclose(np.asarray(out), np.asarray(ref), atol=1e-4, rtol=1e-4)
    print("KERNEL_OK")
</pallas_src>

<mosaic_0001>
module attributes {stable_mosaic.version = 11 : i64} {
  func.func @kernel(%arg0: memref<5x512xf32, #tpu.memory_space<vmem>>, %arg1: memref<8x17xf32, #tpu.memory_space<vmem>>, %arg2: memref<8x512xf32, #tpu.memory_space<vmem>>) attributes {dimension_semantics = [], scalar_prefetch = 0 : i64, scratch_operands = 0 : i64, tpu.core_type = #tpu.core_type<tc>} {
    %c0 = arith.constant 0 : index
    %c0_0 = arith.constant 0 : index
    %0 = vector.load %arg0[%c0, %c0_0] : memref<5x512xf32, #tpu.memory_space<vmem>>, vector<5x512xf32>
    %c0_1 = arith.constant 0 : index
    %c0_2 = arith.constant 0 : index
    %1 = vector.load %arg1[%c0_1, %c0_2] : memref<8x17xf32, #tpu.memory_space<vmem>>, vector<8x17xf32>
    %2 = vector.extract_strided_slice %0 {offsets = [4, 0], sizes = [1, 512], strides = [1, 1]} : vector<5x512xf32> to vector<1x512xf32>
    %3 = arith.fptosi %2 : vector<1x512xf32> to vector<1x512xi32>
    %4 = vector.extract_strided_slice %1 {offsets = [0, 0], sizes = [8, 1], strides = [1, 1]} : vector<8x17xf32> to vector<8x1xf32>
    %5 = vector.extract_strided_slice %0 {offsets = [0, 0], sizes = [1, 512], strides = [1, 1]} : vector<5x512xf32> to vector<1x512xf32>
    %6 = vector.broadcast %4 : vector<8x1xf32> to vector<8x512xf32>
    %7 = vector.broadcast %5 : vector<1x512xf32> to vector<8x512xf32>
    %8 = arith.mulf %6, %7 : vector<8x512xf32>
    %9 = vector.extract_strided_slice %1 {offsets = [0, 1], sizes = [8, 1], strides = [1, 1]} : vector<8x17xf32> to vector<8x1xf32>
    %10 = vector.extract_strided_slice %0 {offsets = [1, 0], sizes = [1, 512], strides = [1, 1]} : vector<5x512xf32> to vector<1x512xf32>
    %11 = vector.broadcast %9 : vector<8x1xf32> to vector<8x512xf32>
    %12 = vector.broadcast %10 : vector<1x512xf32> to vector<8x512xf32>
    %13 = arith.mulf %11, %12 : vector<8x512xf32>
    %14 = arith.addf %8, %13 : vector<8x512xf32>
    %15 = vector.extract_strided_slice %1 {offsets = [0, 2], sizes = [8, 1], strides = [1, 1]} : vector<8x17xf32> to vector<8x1xf32>
    %16 = vector.extract_strided_slice %0 {offsets = [2, 0], sizes = [1, 512], strides = [1, 1]} : vector<5x512xf32> to vector<1x512xf32>
    %17 = vector.broadcast %15 : vector<8x1xf32> to vector<8x512xf32>
    %18 = vector.broadcast %16 : vector<1x512xf32> to vector<8x512xf32>
    %19 = arith.mulf %17, %18 : vector<8x512xf32>
    %20 = arith.addf %14, %19 : vector<8x512xf32>
    %21 = vector.extract_strided_slice %1 {offsets = [0, 3], sizes = [8, 1], strides = [1, 1]} : vector<8x17xf32> to vector<8x1xf32>
    %22 = vector.extract_strided_slice %0 {offsets = [3, 0], sizes = [1, 512], strides = [1, 1]} : vector<5x512xf32> to vector<1x512xf32>
    %23 = vector.broadcast %21 : vector<8x1xf32> to vector<8x512xf32>
    %24 = vector.broadcast %22 : vector<1x512xf32> to vector<8x512xf32>
    %25 = arith.mulf %23, %24 : vector<8x512xf32>
    %26 = arith.addf %20, %25 : vector<8x512xf32>
    %cst = arith.constant dense<0.000000e+00> : vector<8xf32>
    %27 = vector.multi_reduction <add>, %26, %cst [1] : vector<8x512xf32> to vector<8xf32>
    %28 = vector.shape_cast %27 : vector<8xf32> to vector<8x1xf32>
    %cst_3 = arith.constant 0.001953125 : f32
    %29 = vector.broadcast %cst_3 : f32 to vector<8x1xf32>
    %30 = arith.mulf %28, %29 : vector<8x1xf32>
    %31 = arith.mulf %26, %26 : vector<8x512xf32>
    %cst_4 = arith.constant dense<0.000000e+00> : vector<8xf32>
    %32 = vector.multi_reduction <add>, %31, %cst_4 [1] : vector<8x512xf32> to vector<8xf32>
    %33 = vector.shape_cast %32 : vector<8xf32> to vector<8x1xf32>
    %cst_5 = arith.constant 0.001953125 : f32
    %34 = vector.broadcast %cst_5 : f32 to vector<8x1xf32>
    %35 = arith.mulf %33, %34 : vector<8x1xf32>
    %36 = arith.mulf %30, %30 : vector<8x1xf32>
    %37 = arith.subf %35, %36 : vector<8x1xf32>
    %cst_6 = arith.constant 9.99999974E-6 : f32
    %38 = vector.broadcast %cst_6 : f32 to vector<8x1xf32>
    %39 = arith.addf %37, %38 : vector<8x1xf32>
    %40 = math.rsqrt %39 : vector<8x1xf32>
    %41 = vector.extract_strided_slice %1 {offsets = [0, 13], sizes = [8, 1], strides = [1, 1]} : vector<8x17xf32> to vector<8x1xf32>
    %42 = arith.mulf %40, %41 : vector<8x1xf32>
    %43 = vector.broadcast %30 : vector<8x1xf32> to vector<8x512xf32>
    %44 = arith.subf %26, %43 : vector<8x512xf32>
    %45 = vector.broadcast %42 : vector<8x1xf32> to vector<8x512xf32>
    %46 = arith.mulf %44, %45 : vector<8x512xf32>
    %47 = vector.extract_strided_slice %1 {offsets = [0, 14], sizes = [8, 1], strides = [1, 1]} : vector<8x17xf32> to vector<8x1xf32>
    %48 = vector.broadcast %47 : vector<8x1xf32> to vector<8x512xf32>
    %49 = arith.addf %46, %48 : vector<8x512xf32>
    %c17_i32 = arith.constant 17 : i32
    %50 = tpu.dynamic_rotate %49 by %c17_i32 dim 1 : vector<8x512xf32>, i32 -> vector<8x512xf32>
    %c1_i32 = arith.constant 1 : i32
    %51 = vector.broadcast %c1_i32 : i32 to vector<1x512xi32>
    %52 = arith.andi %3, %51 : vector<1x512xi32>
    %c0_i32 = arith.constant 0 : i32
    %53 = vector.broadcast %c0_i32 : i32 to vector<1x512xi32>
    %54 = arith.cmpi ne, %52, %53 : vector<1x512xi32>
    %55 = vector.extract_strided_slice %1 {offsets = [0, 4], sizes = [8, 1], strides = [1, 1]} : vector<8x17xf32> to vector<8x1xf32>
    %cst_7 = arith.constant 0.000000e+00 : f32
    %56 = vector.shape_cast %54 : vector<1x512xi1> to vector<1x512xi1>
    %57 = vector.broadcast %56 : vector<1x512xi1> to vector<8x512xi1>
    %58 = vector.broadcast %cst_7 : f32 to vector<8x512xf32>
    %59 = arith.select %57, %50, %58 : vector<8x512xi1>, vector<8x512xf32>
    %60 = vector.broadcast %55 : vector<8x1xf32> to vector<8x512xf32>
    %61 = arith.mulf %60, %59 : vector<8x512xf32>
    %c16_i32 = arith.constant 16 : i32
    %62 = tpu.dynamic_rotate %49 by %c16_i32 dim 1 : vector<8x512xf32>, i32 -> vector<8x512xf32>
    %c2_i32 = arith.constant 2 : i32
    %63 = vector.broadcast %c2_i32 : i32 to vector<1x512xi32>
    %64 = arith.andi %3, %63 : vector<1x512xi32>
    %c0_i32_8 = arith.constant 0 : i32
    %65 = vector.broadcast %c0_i32_8 : i32 to vector<1x512xi32>
    %66 = arith.cmpi ne, %64, %65 : vector<1x512xi32>
    %67 = vector.extract_strided_slice %1 {offsets = [0, 5], sizes = [8, 1], strides = [1, 1]} : vector<8x17xf32> to vector<8x1xf32>
    %cst_9 = arith.constant 0.000000e+00 : f32
    %68 = vector.shape_cast %66 : vector<1x512xi1> to vector<1x512xi1>
    %69 = vector.broadcast %68 : vector<1x512xi1> to vector<8x512xi1>
    %70 = vector.broadcast %cst_9 : f32 to vector<8x512xf32>
    %71 = arith.select %69, %62, %70 : vector<8x512xi1>, vector<8x512xf32>
    %72 = vector.broadcast %67 : vector<8x1xf32> to vector<8x512xf32>
    %73 = arith.mulf %72, %71 : vector<8x512xf32>
    %74 = arith.addf %61, %73 : vector<8x512xf32>
    %c15_i32 = arith.constant 15 : i32
    %75 = tpu.dynamic_rotate %49 by %c15_i32 dim 1 : vector<8x512xf32>, i32 -> vector<8x512xf32>
    %c4_i32 = arith.constant 4 : i32
    %76 = vector.broadcast %c4_i32 : i32 to vector<1x512xi32>
    %77 = arith.andi %3, %76 : vector<1x512xi32>
    %c0_i32_10 = arith.constant 0 : i32
    %78 = vector.broadcast %c0_i32_10 : i32 to vector<1x512xi32>
    %79 = arith.cmpi ne, %77, %78 : vector<1x512xi32>
    %80 = vector.extract_strided_slice %1 {offsets = [0, 6], sizes = [8, 1], strides = [1, 1]} : vector<8x17xf32> to vector<8x1xf32>
    %cst_11 = arith.constant 0.000000e+00 : f32
    %81 = vector.shape_cast %79 : vector<1x512xi1> to vector<1x512xi1>
    %82 = vector.broadcast %81 : vector<1x512xi1> to vector<8x512xi1>
    %83 = vector.broadcast %cst_11 : f32 to vector<8x512xf32>
    %84 = arith.select %82, %75, %83 : vector<8x512xi1>, vector<8x512xf32>
    %85 = vector.broadcast %80 : vector<8x1xf32> to vector<8x512xf32>
    %86 = arith.mulf %85, %84 : vector<8x512xf32>
    %87 = arith.addf %74, %86 : vector<8x512xf32>
    %c1_i32_12 = arith.constant 1 : i32
    %88 = tpu.dynamic_rotate %49 by %c1_i32_12 dim 1 : vector<8x512xf32>, i32 -> vector<8x512xf32>
    %c8_i32 = arith.constant 8 : i32
    %89 = vector.broadcast %c8_i32 : i32 to vector<1x512xi32>
    %90 = arith.andi %3, %89 : vector<1x512xi32>
    %c0_i32_13 = arith.constant 0 : i32
    %91 = vector.broadcast %c0_i32_13 : i32 to vector<1x512xi32>
    %92 = arith.cmpi ne, %90, %91 : vector<1x512xi32>
    %93 = vector.extract_strided_slice %1 {offsets = [0, 7], sizes = [8, 1], strides = [1, 1]} : vector<8x17xf32> to vector<8x1xf32>
    %cst_14 = arith.constant 0.000000e+00 : f32
    %94 = vector.shape_cast %92 : vector<1x512xi1> to vector<1x512xi1>
    %95 = vector.broadcast %94 : vector<1x512xi1> to vector<8x512xi1>
    %96 = vector.broadcast %cst_14 : f32 to vector<8x512xf32>
    %97 = arith.select %95, %88, %96 : vector<8x512xi1>, vector<8x512xf32>
    %98 = vector.broadcast %93 : vector<8x1xf32> to vector<8x512xf32>
    %99 = arith.mulf %98, %97 : vector<8x512xf32>
    %100 = arith.addf %87, %99 : vector<8x512xf32>
    %c16_i32_15 = arith.constant 16 : i32
    %101 = vector.broadcast %c16_i32_15 : i32 to vector<1x512xi32>
    %102 = arith.andi %3, %101 : vector<1x512xi32>
    %c0_i32_16 = arith.constant 0 : i32
    %103 = vector.broadcast %c0_i32_16 : i32 to vector<1x512xi32>
    %104 = arith.cmpi ne, %102, %103 : vector<1x512xi32>
    %105 = vector.extract_strided_slice %1 {offsets = [0, 8], sizes = [8, 1], strides = [1, 1]} : vector<8x17xf32> to vector<8x1xf32>
    %cst_17 = arith.constant 0.000000e+00 : f32
    %106 = vector.shape_cast %104 : vector<1x512xi1> to vector<1x512xi1>
    %107 = vector.broadcast %106 : vector<1x512xi1> to vector<8x512xi1>
    %108 = vector.broadcast %cst_17 : f32 to vector<8x512xf32>
    %109 = arith.select %107, %49, %108 : vector<8x512xi1>, vector<8x512xf32>
    %110 = vector.broadcast %105 : vector<8x1xf32> to vector<8x512xf32>
    %111 = arith.mulf %110, %109 : vector<8x512xf32>
    %112 = arith.addf %100, %111 : vector<8x512xf32>
    %c511_i32 = arith.constant 511 : i32
    %113 = tpu.dynamic_rotate %49 by %c511_i32 dim 1 : vector<8x512xf32>, i32 -> vector<8x512xf32>
    %c32_i32 = arith.constant 32 : i32
    %114 = vector.broadcast %c32_i32 : i32 to vector<1x512xi32>
    %115 = arith.andi %3, %114 : vector<1x512xi32>
    %c0_i32_18 = arith.constant 0 : i32
    %116 = vector.broadcast %c0_i32_18 : i32 to vector<1x512xi32>
    %117 = arith.cmpi ne, %115, %116 : vector<1x512xi32>
    %118 = vector.extract_strided_slice %1 {offsets = [0, 9], sizes = [8, 1], strides = [1, 1]} : vector<8x17xf32> to vector<8x1xf32>
    %cst_19 = arith.constant 0.000000e+00 : f32
    %119 = vector.shape_cast %117 : vector<1x512xi1> to vector<1x512xi1>
    %120 = vector.broadcast %119 : vector<1x512xi1> to vector<8x512xi1>
    %121 = vector.broadcast %cst_19 : f32 to vector<8x512xf32>
    %122 = arith.select %120, %113, %121 : vector<8x512xi1>, vector<8x512xf32>
    %123 = vector.broadcast %118 : vector<8x1xf32> to vector<8x512xf32>
    %124 = arith.mulf %123, %122 : vector<8x512xf32>
    %125 = arith.addf %112, %124 : vector<8x512xf32>
    %c497_i32 = arith.constant 497 : i32
    %126 = tpu.dynamic_rotate %49 by %c497_i32 dim 1 : vector<8x512xf32>, i32 -> vector<8x512xf32>
    %c64_i32 = arith.constant 64 : i32
    %127 = vector.broadcast %c64_i32 : i32 to vector<1x512xi32>
    %128 = arith.andi %3, %127 : vector<1x512xi32>
    %c0_i32_20 = arith.constant 0 : i32
    %129 = vector.broadcast %c0_i32_20 : i32 to vector<1x512xi32>
    %130 = arith.cmpi ne, %128, %129 : vector<1x512xi32>
    %131 = vector.extract_strided_slice %1 {offsets = [0, 10], sizes = [8, 1], strides = [1, 1]} : vector<8x17xf32> to vector<8x1xf32>
    %cst_21 = arith.constant 0.000000e+00 : f32
    %132 = vector.shape_cast %130 : vector<1x512xi1> to vector<1x512xi1>
    %133 = vector.broadcast %132 : vector<1x512xi1> to vector<8x512xi1>
    %134 = vector.broadcast %cst_21 : f32 to vector<8x512xf32>
    %135 = arith.select %133, %126, %134 : vector<8x512xi1>, vector<8x512xf32>
    %136 = vector.broadcast %131 : vector<8x1xf32> to vector<8x512xf32>
    %137 = arith.mulf %136, %135 : vector<8x512xf32>
    %138 = arith.addf %125, %137 : vector<8x512xf32>
    %c496_i32 = arith.constant 496 : i32
    %139 = tpu.dynamic_rotate %49 by %c496_i32 dim 1 : vector<8x512xf32>, i32 -> vector<8x512xf32>
    %c128_i32 = arith.constant 128 : i32
    %140 = vector.broadcast %c128_i32 : i32 to vector<1x512xi32>
    %141 = arith.andi %3, %140 : vector<1x512xi32>
    %c0_i32_22 = arith.constant 0 : i32
    %142 = vector.broadcast %c0_i32_22 : i32 to vector<1x512xi32>
    %143 = arith.cmpi ne, %141, %142 : vector<1x512xi32>
    %144 = vector.extract_strided_slice %1 {offsets = [0, 11], sizes = [8, 1], strides = [1, 1]} : vector<8x17xf32> to vector<8x1xf32>
    %cst_23 = arith.constant 0.000000e+00 : f32
    %145 = vector.shape_cast %143 : vector<1x512xi1> to vector<1x512xi1>
    %146 = vector.broadcast %145 : vector<1x512xi1> to vector<8x512xi1>
    %147 = vector.broadcast %cst_23 : f32 to vector<8x512xf32>
    %148 = arith.select %146, %139, %147 : vector<8x512xi1>, vector<8x512xf32>
    %149 = vector.broadcast %144 : vector<8x1xf32> to vector<8x512xf32>
    %150 = arith.mulf %149, %148 : vector<8x512xf32>
    %151 = arith.addf %138, %150 : vector<8x512xf32>
    %c495_i32 = arith.constant 495 : i32
    %152 = tpu.dynamic_rotate %49 by %c495_i32 dim 1 : vector<8x512xf32>, i32 -> vector<8x512xf32>
    %c256_i32 = arith.constant 256 : i32
    %153 = vector.broadcast %c256_i32 : i32 to vector<1x512xi32>
    %154 = arith.andi %3, %153 : vector<1x512xi32>
    %c0_i32_24 = arith.constant 0 : i32
    %155 = vector.broadcast %c0_i32_24 : i32 to vector<1x512xi32>
    %156 = arith.cmpi ne, %154, %155 : vector<1x512xi32>
    %157 = vector.extract_strided_slice %1 {offsets = [0, 12], sizes = [8, 1], strides = [1, 1]} : vector<8x17xf32> to vector<8x1xf32>
    %cst_25 = arith.constant 0.000000e+00 : f32
    %158 = vector.shape_cast %156 : vector<1x512xi1> to vector<1x512xi1>
    %159 = vector.broadcast %158 : vector<1x512xi1> to vector<8x512xi1>
    %160 = vector.broadcast %cst_25 : f32 to vector<8x512xf32>
    %161 = arith.select %159, %152, %160 : vector<8x512xi1>, vector<8x512xf32>
    %162 = vector.broadcast %157 : vector<8x1xf32> to vector<8x512xf32>
    %163 = arith.mulf %162, %161 : vector<8x512xf32>
    %164 = arith.addf %151, %163 : vector<8x512xf32>
    %cst_26 = arith.constant dense<0.000000e+00> : vector<8xf32>
    %165 = vector.multi_reduction <add>, %164, %cst_26 [1] : vector<8x512xf32> to vector<8xf32>
    %166 = vector.shape_cast %165 : vector<8xf32> to vector<8x1xf32>
    %cst_27 = arith.constant 0.001953125 : f32
    %167 = vector.broadcast %cst_27 : f32 to vector<8x1xf32>
    %168 = arith.mulf %166, %167 : vector<8x1xf32>
    %169 = arith.mulf %164, %164 : vector<8x512xf32>
    %cst_28 = arith.constant dense<0.000000e+00> : vector<8xf32>
    %170 = vector.multi_reduction <add>, %169, %cst_28 [1] : vector<8x512xf32> to vector<8xf32>
    %171 = vector.shape_cast %170 : vector<8xf32> to vector<8x1xf32>
    %cst_29 = arith.constant 0.001953125 : f32
    %172 = vector.broadcast %cst_29 : f32 to vector<8x1xf32>
    %173 = arith.mulf %171, %172 : vector<8x1xf32>
    %174 = arith.mulf %168, %168 : vector<8x1xf32>
    %175 = arith.subf %173, %174 : vector<8x1xf32>
    %cst_30 = arith.constant 9.99999974E-6 : f32
    %176 = vector.broadcast %cst_30 : f32 to vector<8x1xf32>
    %177 = arith.addf %175, %176 : vector<8x1xf32>
    %178 = math.rsqrt %177 : vector<8x1xf32>
    %179 = vector.extract_strided_slice %1 {offsets = [0, 15], sizes = [8, 1], strides = [1, 1]} : vector<8x17xf32> to vector<8x1xf32>
    %180 = arith.mulf %178, %179 : vector<8x1xf32>
    %181 = vector.broadcast %168 : vector<8x1xf32> to vector<8x512xf32>
    %182 = arith.subf %164, %181 : vector<8x512xf32>
    %183 = vector.broadcast %180 : vector<8x1xf32> to vector<8x512xf32>
    %184 = arith.mulf %182, %183 : vector<8x512xf32>
    %185 = vector.extract_strided_slice %1 {offsets = [0, 16], sizes = [8, 1], strides = [1, 1]} : vector<8x17xf32> to vector<8x1xf32>
    %186 = vector.broadcast %185 : vector<8x1xf32> to vector<8x512xf32>
    %187 = arith.addf %184, %186 : vector<8x512xf32>
    %cst_31 = arith.constant 0.000000e+00 : f32
    %188 = vector.broadcast %cst_31 : f32 to vector<8x512xf32>
    %189 = arith.maximumf %187, %188 : vector<8x512xf32>
    %c0_32 = arith.constant 0 : index
    %c0_33 = arith.constant 0 : index
    %190 = vector.load %arg2[%c0_32, %c0_33] : memref<8x512xf32, #tpu.memory_space<vmem>>, vector<8x512xf32>
    tpu.vector_store %arg2[%c0_32, %c0_33], %189 {strides = array<i32>} : memref<8x512xf32, #tpu.memory_space<vmem>>, vector<8x512xf32>,
    return
  }
}

</mosaic_0001>

<bundles_post_ra>
// kernel: tpu_custom_call.1
= control target key start
LH: loop header
LB: loop body
LE: loop exit
PB: predicated region body
PF: predicated region fallthrough
CT: control target
= control target key end

     0   :  { %7 = vsyncpa [#allocation3], 0  ;;  %s1485_s0 = inlined_call_operand.hbm [shape: f32[5,512], index: 0, kind: input, shape index: {}]   ;;  %s1486_s1 = inlined_call_operand.hbm [shape: f32[8,17], index: 1, kind: input, shape index: {}]   ;;  %s1487_s2 = inlined_call_operand.hbm [shape: f32[8,512], index: 2, kind: output, shape index: {}]  }
   0x1   :  { %8 = vsyncpa [#allocation6], 0 }
   0x2   :  { %9 = vsyncpa [#allocation4], 0  ;;  %s15_s11 = sshll.u32 %s1485_s0, 4  ;;  %s812_s12 = smov [#allocation2]   ;;  %s16_s11 = int_to_ptr.hbm [resolvable:$true] %s15_s11 }
   0x3   :  { %s17_s13 = sshll.u32 %s812_s12, 4  ;;  %s26_s16 = sshll.u32 %s1486_s1, 4  ;;  %s18_s13 = int_to_ptr.vmem [resolvable:$true] %s17_s13  ;;  %s27_s16 = int_to_ptr.hbm [resolvable:$true] %s26_s16 }
   0x4   :  { %20 = dma.hbm_to_vmem [thread:$0]  %s16_s11, 512, %s18_s13, [#allocation3]  }
   0x5   :  { %s813_s17 = smov [#allocation5]  }
   0x6   :  { %s28_s18 = sshll.u32 %s813_s17, 4  ;;  %s29_s18 = int_to_ptr.vmem [resolvable:$true] %s28_s18 }
   0x7   :  { %31 = dma.hbm_to_vmem [thread:$0]  %s27_s16, 128, %s29_s18, [#allocation6]  }
   0x8   :  { %806 = dma.done.wait [#allocation3], 512  }
   0x9   :  { %807 = vsyncadd [#allocation3], 4294966784 }
   0xa   :  { %808 = dma.done.wait [#allocation6], 128  }
   0xb   :  { %809 = vsyncadd [#allocation6], 4294967168  ;;  %v814_v0 = vmov 0   ;;  %v815_v1 = vmov 2   ;;  %v816_v2 = vmov 14   ;;  %v862_v3 = vld [vmem:[#allocation5] sm:$0xff] }
   0xc   :  { %712 = vset.pattern.permute.xlu0 %v814_v0  ;;  %714 = vset.pattern.permute.xlu1 %v815_v1  ;;  %v817_v4 = vmov 1   ;;  %v818_v5 = vmov 3   ;;  %v819_v6 = vmov 5   ;;  %v870_v9 = vld [vmem:[#allocation2] sm:$0x1f]  ;;  %s828_s0 = smov 16  }
   0xd   :  { %716 = vset.pattern.permute.xlu2 %v816_v2  ;;  %51 = vperm.xlu0 %712, %v862_v3   ;;  %v872_v10 = vld [vmem:[#allocation2 + $0x8] sm:$0x1f]  ;;  %v874_v11 = vld [vmem:[#allocation2 + $0x10] sm:$0x1f]  ;;  %v876_v12 = vld [vmem:[#allocation2 + $0x18] sm:$0x1f] }
   0xe   :  { %79 = vperm.xlu1 %714, %v862_v3   ;;  %154 = vperm.xlu2 %716, %v862_v3   ;;  %v54_v13 = vperm.slane %v870_v9, 0  ;;  %v55_v14 = vperm.slane %v872_v10, 0  ;;  %v56_v15 = vperm.slane %v874_v11, 0  ;;  %v57_v16 = vperm.slane %v876_v12, 0  ;;  %s829_s1 = smov 17   ;;  %s830_s19 = smov 15  }
   0xf   :  { %v82_v17 = vperm.slane %v870_v9, 2  ;;  %v66_v18 = vperm.slane %v870_v9, 1  ;;  %v67_v19 = vperm.slane %v872_v10, 1  ;;  %v68_v20 = vperm.slane %v874_v11, 1  ;;  %s831_s20 = smov 1   ;;  %s832_s21 = smov 127  }
  0x10   :  { %v69_v21 = vperm.slane %v876_v12, 1  ;;  %v83_v22 = vperm.slane %v872_v10, 2  ;;  %v84_v23 = vperm.slane %v874_v11, 2  ;;  %v98_v24 = vperm.slane %v870_v9, 3  ;;  %s833_s22 = smov 113   ;;  %s834_s23 = smov 112  }
  0x11   :  { %v99_v25 = vperm.slane %v872_v10, 3  ;;  %v85_v27 = vperm.slane %v876_v12, 2  ;;  %v100_v28 = vperm.slane %v874_v11, 3  ;;  %v101_v29 = vperm.slane %v876_v12, 3  ;;  %s836_s24 = smov 111   ;;  %s839_s25 = smov [#allocation7]  }
  0x12   :  { %vm669_vm3 = vcmp.lt.s32.totalorder %v872_v10, 0  ;;  %vm664_vm4 = vcmp.lt.s32.totalorder %v870_v9, 0  ;;  %vm679_vm5 = vcmp.lt.s32.totalorder %v876_v12, 0  ;;  %vm674_vm6 = vcmp.lt.s32.totalorder %v874_v11, 0  ;;  %s651_s26 = sshll.u32 %s839_s25, 4  ;;  %s653_s29 = sshll.u32 %s1487_s2, 4  ;;  %s652_s26 = int_to_ptr.vmem [resolvable:$true] %s651_s26  ;;  %s654_s29 = int_to_ptr.hbm [resolvable:$true] %s653_s29 }
  0x15   :  { %713 = vset.pattern.permute.xlu0 %v817_v4 }
  0x16   :  { %715 = vset.pattern.permute.xlu1 %v818_v5  ;;  %63 = vperm.xlu0 %713, %v862_v3  }
  0x17   :  { %95 = vperm.xlu1 %715, %v862_v3   ;;  %718 = vset.pattern.permute.xlu2 %v819_v6 }
  0x18   :  { %246 = vperm.xlu2 %718, %v862_v3  }
  0x7f   :  { %v52_v7 = vpop.permute.xlu0 %51 }
  0x80   :  { %v80_v8 = vpop.permute.xlu1 %79  ;;  %v58_v26 = vmul.f32 %v54_v13, %v52_v7  ;;  %v59_v30 = vmul.f32 %v55_v14, %v52_v7  ;;  %v60_v31 = vmul.f32 %v56_v15, %v52_v7  ;;  %v61_v32 = vmul.f32 %v57_v16, %v52_v7  ;;  %v914_v7 = vpop.permute.xlu2 %154 }
  0x81   :  { %v86_v33 = vmul.f32 %v82_v17, %v80_v8  ;;  %v87_v40 = vmul.f32 %v83_v22, %v80_v8  ;;  %v88_v41 = vmul.f32 %v84_v23, %v80_v8  ;;  %v89_v48 = vmul.f32 %v85_v27, %v80_v8 }
  0x82   :  { %v820_v8 = vmov 7   ;;  %v821_v14 = vmov 9   ;;  %v822_v16 = vmov 13   ;;  %v823_v17 = vmov 6  }
  0x83   :  { %720 = vset.pattern.permute.xlu1 %v820_v8  ;;  %719 = vset.pattern.permute.xlu2 %v823_v17  ;;  %v169_v8 = vlaneseq }
  0x84   :  { %344 = vperm.xlu1 %720, %v862_v3  }
  0x85   :  { %v1014_v17 = vand.u32 127, %v169_v8 }
  0x87   :  { %vm171_vm11 = vcmp.lt.s32.totalorder %v1014_v17, 17 }
  0x88   :  { %v64_v34 = vpop.permute.xlu0 %63  ;;  %v917_v13 = vpop.permute.xlu2 %246 }
  0x89   :  { %v96_v35 = vpop.permute.xlu1 %95  ;;  %v70_v36 = vmul.f32 %v66_v18, %v64_v34  ;;  %v71_v37 = vmul.f32 %v67_v19, %v64_v34  ;;  %v72_v38 = vmul.f32 %v68_v20, %v64_v34  ;;  %v73_v39 = vmul.f32 %v69_v21, %v64_v34 }
  0x8a   :  { %v102_v42 = vmul.f32 %v98_v24, %v96_v35  ;;  %v103_v43 = vmul.f32 %v99_v25, %v96_v35  ;;  %v104_v52 = vmul.f32 %v100_v28, %v96_v35  ;;  %v105_v53 = vmul.f32 %v101_v29, %v96_v35 }
  0x8b   :  { %v74_v44 = vadd.f32 %v70_v36, %v58_v26  ;;  %v75_v45 = vadd.f32 %v71_v37, %v59_v30  ;;  %v76_v46 = vadd.f32 %v72_v38, %v60_v31  ;;  %v77_v47 = vadd.f32 %v73_v39, %v61_v32 }
  0x8c   :  { %722 = vset.pattern.permute.xlu1 %v821_v14  ;;  %v824_v18 = vmov 4   ;;  %v825_v25 = vmov 8   ;;  %v826_v34 = vmov 10   ;;  %v827_v35 = vmov 11  }
  0x8d   :  { %v90_v49 = vadd.f32 %v86_v33, %v74_v44  ;;  %v91_v50 = vadd.f32 %v87_v40, %v75_v45  ;;  %v92_v51 = vadd.f32 %v88_v41, %v76_v46  ;;  %v93_v56 = vadd.f32 %v89_v48, %v77_v47  ;;  %429 = vperm.xlu1 %722, %v862_v3  }
  0x8e   :  { %717 = vset.pattern.permute.xlu0 %v824_v18 }
  0x8f   :  { %v894_v54 = vadd.f32 %v102_v42, %v90_v49  ;;  %v896_v55 = vadd.f32 %v103_v43, %v91_v50  ;;  %v898_v57 = vadd.f32 %v104_v52, %v92_v51  ;;  %v906_v61 = vadd.f32 %v105_v53, %v93_v56  ;;  %201 = vperm.xlu0 %717, %v862_v3  }
  0x90   :  { %v835_v51 = vmov 12   ;;  %v670_v53 = vceil.f32 %v872_v10 }
  0x91   :  { %v110_v58 = vadd.f32 %v896_v55, %v894_v54  ;;  %v116_v59 = vmul.f32 %v894_v54, %v894_v54  ;;  %v117_v60 = vmul.f32 %v896_v55, %v896_v55  ;;  %v118_v2 = vmul.f32 %v898_v57, %v898_v57 }
  0x92   :  { %v119_v5 = vmul.f32 %v906_v61, %v906_v61 }
  0x93   :  { %v111_v62 = vadd.f32 %v110_v58, %v898_v57  ;;  %v120_v1 = vadd.f32 %v117_v60, %v116_v59  ;;  %v665_v59 = vceil.f32 %v870_v9  ;;  %v666_v60 = vfloor.f32 %v870_v9 }
  0x95   :  { %v112_v63 = vadd.f32 %v111_v62, %v906_v61  ;;  %v121_v4 = vadd.f32 %v120_v1, %v118_v2  ;;  %725 = vset.pattern.permute.xlu1 %v822_v16  ;;  %v675_v62 = vceil.f32 %v874_v11  ;;  %v667_v1 = vsel %vm664_vm4, %v665_v59, %v666_v60 }
  0x97   :  { %113 = vadd.xlane.f32.xlu2 %v112_v63  ;;  %v122_v6 = vadd.f32 %v121_v4, %v119_v5  ;;  %723 = vset.pattern.permute.xlu0 %v826_v34 }
  0x98   :  { %478 = vperm.xlu0 %723, %v862_v3  }
  0x9f   :  { %123 = vadd.xlane.f32.xlu2 %v122_v6  ;;  %v1002_v6 = vcvt.f32.s32 %v667_v1 }
  0xa0   :  { %724 = vset.pattern.permute.xlu0 %v827_v35 }
  0xa1   :  { %527 = vperm.xlu0 %724, %v862_v3  }
  0xa9   :  { %726 = vset.pattern.permute.xlu0 %v835_v51 }
  0xb7   :  { %295 = vperm.xlu2 %719, %v862_v3  }
  0xbf   :  { %721 = vset.pattern.permute.xlu2 %v825_v25 }
  0xc0   :  { %380 = vperm.xlu2 %721, %v862_v3  }
  0xf6   :  { %v926_v36 = vpop.permute.xlu1 %344 }
  0xff   :  { %v928_v37 = vpop.permute.xlu1 %429 }
 0x101   :  { %v977_v52 = vpop.permute.xlu0 %201 }
 0x10a   :  { %v114_v15 = vpop.xlane.xlu2 %113 }
 0x10b   :  { %v115_v19 = vmul.f32 0.001953125, %v114_v15 }
 0x10d   :  { %v126_v21 = vmul.f32 %v115_v19, %v115_v19  ;;  %v140_v38 = vsub.f32 %v894_v54, %v115_v19  ;;  %v141_v39 = vsub.f32 %v896_v55, %v115_v19  ;;  %v143_v40 = vsub.f32 %v906_v61, %v115_v19 }
 0x10e   :  { %v142_v48 = vsub.f32 %v898_v57, %v115_v19  ;;  %v671_v54 = vfloor.f32 %v872_v10  ;;  %v985_v57 = vpop.permute.xlu0 %478  ;;  %v681_v61 = vfloor.f32 %v876_v12  ;;  %v676_v10 = vfloor.f32 %v874_v11 }
 0x10f   :  { %v176_v11 = vand.u32 1, %v1002_v6 }
 0x110   :  { %v672_v56 = vsel %vm669_vm3, %v670_v53, %v671_v54  ;;  %v677_v4 = vsel %vm674_vm6, %v675_v62, %v676_v10  ;;  %vm216_vm3 = vcmp.lt.s32.totalorder %v1014_v17, 16 }
 0x111   :  { %v989_v58 = vcvt.f32.s32 %v672_v56  ;;  %v1008_v9 = vcvt.f32.s32 %v677_v4  ;;  %vm180_vm8 = vcmp.ne.s32.totalorder %v176_v11, 0 }
 0x112   :  { %v124_v20 = vpop.xlane.xlu2 %123 }
 0x113   :  { %v125_v22 = vmul.f32 0.001953125, %v124_v20  ;;  %v177_v63 = vand.u32 1, %v989_v58  ;;  %v178_v15 = vand.u32 1, %v1008_v9 }
 0x115   :  { %v127_v23 = vsub.f32 %v125_v22, %v126_v21  ;;  %vm181_vm7 = vcmp.ne.s32.totalorder %v177_v63, 0  ;;  %vm182_vm9 = vcmp.ne.s32.totalorder %v178_v15, 0  ;;  %v184_v21 = vsel %vm180_vm8, 1, %v814_v0 }
 0x117   :  { %v128_v24 = vadd.f32 1e-05, %v127_v23  ;;  %v186_v23 = vsel %vm182_vm9, 1, %v814_v0 }
 0x119   :  { %729 = vrsqrt.f32 %v128_v24  ;;  %vm135_vm1 = vweird.f32 %v128_v24 }
 0x11a   :  { %v983_v55 = vpop.permute.xlu2 %295 }
 0x11f   :  { %v730_v26 = vpop.eup %729 }
 0x120   :  { %v130_v27 = vmul.f32 %v730_v26, %v128_v24  ;;  %vm136_vm0 = vweird.f32 %v730_v26 }
 0x121   :  { %vm137_vm2 = vmor %vm135_vm1, %vm136_vm0 }
 0x122   :  { %v131_v28 = vmul.f32 %v730_v26, %v130_v27  ;;  %v1000_v5 = vpop.permute.xlu2 %380 }
 0x124   :  { %v132_v29 = vmul.f32 0.5, %v131_v28  ;;  %v188_v28 = vperm.slane %v184_v21, 4 }
 0x126   :  { %v133_v30 = vsub.f32 1.5, %v132_v29  ;;  %vm192_vm14 = vcmp.eq.s32.totalorder %v188_v28, 1  ;;  %v355_v28 = vand.u32 16, %v1002_v6 }
 0x128   :  { %v134_v31 = vmul.f32 %v730_v26, %v133_v30  ;;  %v190_v30 = vperm.slane %v186_v23, 4 }
 0x12a   :  { %v138_v32 = vsel %vm137_vm2, %v730_v26, %v134_v31  ;;  %v222_v26 = vand.u32 2, %v989_v58  ;;  %vm194_vm15 = vcmp.eq.s32.totalorder %v190_v30, 1  ;;  %v357_v30 = vand.u32 16, %v1008_v9 }
 0x12b   :  { %v139_v33 = vmul.f32 %v138_v32, %v862_v3 }
 0x12c   :  { %vm226_vm13 = vcmp.ne.s32.totalorder %v222_v26, 0 }
 0x12d   :  { %146 = vperm.xlu1 %725, %v139_v33  }
 0x19f   :  { %v147_v41 = vpop.permute.xlu1 %146 }
 0x1a0   :  { %v149_v42 = vmul.f32 %v147_v41, %v140_v38  ;;  %v150_v43 = vmul.f32 %v147_v41, %v141_v39  ;;  %v152_v44 = vmul.f32 %v147_v41, %v143_v40  ;;  %v151_v49 = vmul.f32 %v147_v41, %v142_v48 }
 0x1a1   :  { %v230_v38 = vsel %vm226_vm13, 1, %v814_v0  ;;  %v223_v39 = vand.u32 2, %v1008_v9 }
 0x1a2   :  { %v934_v45 = vadd.f32 %v914_v7, %v149_v42  ;;  %v937_v46 = vadd.f32 %v914_v7, %v150_v43  ;;  %v940_v47 = vadd.f32 %v914_v7, %v152_v44  ;;  %v947_v50 = vadd.f32 %v914_v7, %v151_v49  ;;  %v1004_v7 = vpop.permute.xlu0 %527 }
 0x1a3   :  { %v234_v54 = vperm.slane %v230_v38, 4  ;;  %vm227_vm1 = vcmp.ne.s32.totalorder %v223_v39, 0 }
 0x1a4   :  { %214 = vrot.lane.b32.xlu2 %v940_v47, %s828_s0  ;;  %163 = vrot.lane.b32.xlu1 %v937_v46, %s829_s1 }
 0x1a5   :  { %161 = vrot.lane.b32.xlu0 %v934_v45, %s829_s1  ;;  %vm238_vm4 = vcmp.eq.s32.totalorder %v234_v54, 1 }
 0x1ac   :  { %259 = vrot.lane.b32.xlu2 %v937_v46, %s830_s19  ;;  %167 = vrot.lane.b32.xlu1 %v940_v47, %s829_s1 }
 0x1ad   :  { %165 = vrot.lane.b32.xlu0 %v947_v50, %s829_s1 }
 0x1b4   :  { %312 = vrot.lane.b32.xlu2 %v940_v47, %s831_s20  ;;  %210 = vrot.lane.b32.xlu1 %v937_v46, %s828_s0 }
 0x1b5   :  { %208 = vrot.lane.b32.xlu0 %v934_v45, %s828_s0 }
 0x1bc   :  { %395 = vrot.lane.b32.xlu2 %v947_v50, %s832_s21  ;;  %212 = vrot.lane.b32.xlu1 %v947_v50, %s828_s0 }
 0x1bd   :  { %263 = vrot.lane.b32.xlu0 %v940_v47, %s830_s19 }
 0x1c4   :  { %440 = vrot.lane.b32.xlu2 %v934_v45, %s833_s22  ;;  %257 = vrot.lane.b32.xlu1 %v934_v45, %s830_s19 }
 0x1c5   :  { %306 = vrot.lane.b32.xlu0 %v934_v45, %s831_s20 }
 0x1cc   :  { %446 = vrot.lane.b32.xlu2 %v940_v47, %s833_s22  ;;  %261 = vrot.lane.b32.xlu1 %v947_v50, %s830_s19 }
 0x1cd   :  { %310 = vrot.lane.b32.xlu0 %v947_v50, %s831_s20 }
 0x1d4   :  { %491 = vrot.lane.b32.xlu2 %v937_v46, %s834_s23  ;;  %308 = vrot.lane.b32.xlu1 %v937_v46, %s831_s20 }
 0x1d5   :  { %391 = vrot.lane.b32.xlu0 %v934_v45, %s832_s21 }
 0x1dc   :  { %495 = vrot.lane.b32.xlu2 %v940_v47, %s834_s23  ;;  %393 = vrot.lane.b32.xlu1 %v937_v46, %s832_s21 }
 0x1dd   :  { %397 = vrot.lane.b32.xlu0 %v940_v47, %s832_s21 }
 0x1e4   :  { %540 = vrot.lane.b32.xlu2 %v937_v46, %s836_s24  ;;  %444 = vrot.lane.b32.xlu1 %v947_v50, %s833_s22 }
 0x1e5   :  { %442 = vrot.lane.b32.xlu0 %v937_v46, %s833_s22 }
 0x1ec   :  { %544 = vrot.lane.b32.xlu2 %v940_v47, %s836_s24  ;;  %489 = vrot.lane.b32.xlu1 %v934_v45, %s834_s23 }
 0x1ed   :  { %576 = vperm.xlu0 %726, %v862_v3   ;;  %v680_v3 = vceil.f32 %v876_v12  ;;  %v185_v12 = vsel %vm181_vm7, 1, %v814_v0 }
 0x1ee   :  { %v189_v18 = vperm.slane %v185_v12, 4 }
 0x1ef   :  { %v682_v2 = vsel %vm679_vm5, %v680_v3, %v681_v61  ;;  %v231_v3 = vsel %vm227_vm1, 1, %v814_v0 }
 0x1f0   :  { %v1006_v14 = vcvt.f32.s32 %v682_v2  ;;  %vm193_vm12 = vcmp.eq.s32.totalorder %v189_v18, 1  ;;  %v235_v10 = vperm.slane %v231_v3, 4 }
 0x1f2   :  { %v179_v16 = vand.u32 1, %v1006_v14  ;;  %v224_v40 = vand.u32 2, %v1006_v14  ;;  %vm239_vm5 = vcmp.eq.s32.totalorder %v235_v10, 1  ;;  %v358_v4 = vand.u32 16, %v1006_v14 }
 0x1f3   :  { %v322_v21 = vand.u32 8, %v1006_v14 }
 0x1f4   :  { %493 = vrot.lane.b32.xlu1 %v947_v50, %s834_s23  ;;  %vm183_vm10 = vcmp.ne.s32.totalorder %v179_v16, 0  ;;  %vm228_vm2 = vcmp.ne.s32.totalorder %v224_v40, 0  ;;  %v273_v16 = vand.u32 4, %v1006_v14  ;;  %vm362_vm7 = vcmp.ne.s32.totalorder %v358_v4, 0 }
 0x1f5   :  { %v187_v24 = vsel %vm183_vm10, 1, %v814_v0  ;;  %v232_v59 = vsel %vm228_vm2, 1, %v814_v0  ;;  %vm326_vm9 = vcmp.ne.s32.totalorder %v322_v21, 0  ;;  %vm314_vm2 = vcmp.lt.s32.totalorder %v1014_v17, 1 }
 0x1f6   :  { %v191_v31 = vperm.slane %v187_v24, 4  ;;  %v236_v63 = vperm.slane %v232_v59, 4  ;;  %vm277_vm8 = vcmp.ne.s32.totalorder %v273_v16, 0 }
 0x1f8   :  { %vm195_vm0 = vcmp.eq.s32.totalorder %v191_v31, 1  ;;  %vm240_vm6 = vcmp.eq.s32.totalorder %v236_v63, 1 }
 0x1fc   :  { %538 = vrot.lane.b32.xlu1 %v934_v45, %s836_s24 }
 0x1fe   :  { %v1016_v19 = vpop.permute.xlu2 %214 }
 0x204   :  { %542 = vrot.lane.b32.xlu1 %v947_v50, %s836_s24 }
 0x206   :  { %v1026_v32 = vpop.permute.xlu2 %259 }
 0x20e   :  { %v1045_v60 = vpop.permute.xlu2 %312 }
 0x216   :  { %v164_v20 = vpop.permute.xlu1 %163 }
 0x217   :  { %v162_v22 = vpop.permute.xlu0 %161 }
 0x218   :  { %v174_v25 = vsel %vm171_vm11, %v162_v22, %v164_v20 }
 0x219   :  { %v197_v27 = vsel %vm193_vm12, %v174_v25, 0.0  ;;  %vm361_vm12 = vcmp.ne.s32.totalorder %v357_v30, 0 }
 0x21a   :  { %v205_v29 = vmul.f32 %v977_v52, %v197_v27  ;;  %v356_v27 = vand.u32 16, %v989_v58 }
 0x21c   :  { %vm360_vm10 = vcmp.ne.s32.totalorder %v356_v27, 0 }
 0x21e   :  { %v168_v33 = vpop.permute.xlu1 %167 }
 0x21f   :  { %v175_v34 = vsel %vm171_vm11, %v168_v33, %v162_v22  ;;  %v166_v35 = vpop.permute.xlu0 %165  ;;  %v1065_v22 = vpop.permute.xlu2 %395 }
 0x220   :  { %v196_v41 = vsel %vm192_vm14, %v175_v34, 0.0  ;;  %v172_v42 = vsel %vm171_vm11, %v166_v35, %v168_v33  ;;  %v173_v43 = vsel %vm171_vm11, %v164_v20, %v166_v35  ;;  %v281_v33 = vsel %vm277_vm8, 1, %v814_v0 }
 0x221   :  { %v1038_v44 = vmul.f32 %v977_v52, %v196_v41  ;;  %v198_v48 = vsel %vm194_vm15, %v173_v43, 0.0  ;;  %v199_v49 = vsel %vm195_vm0, %v172_v42, 0.0  ;;  %v330_v35 = vsel %vm326_vm9, 1, %v814_v0 }
 0x222   :  { %v206_v51 = vmul.f32 %v977_v52, %v198_v48  ;;  %v207_v53 = vmul.f32 %v977_v52, %v199_v49  ;;  %vm359_vm11 = vcmp.ne.s32.totalorder %v355_v28, 0  ;;  %v285_v39 = vperm.slane %v281_v33, 4 }
 0x223   :  { %v334_v40 = vperm.slane %v330_v35, 4  ;;  %v364_v41 = vsel %vm360_vm10, 1, %v814_v0  ;;  %v363_v42 = vsel %vm359_vm11, 1, %v814_v0  ;;  %v221_v48 = vand.u32 2, %v1002_v6 }
 0x224   :  { %vm1092_vm14 = vcmp.eq.s32.totalorder %v285_v39, 1  ;;  %v367_v3 = vperm.slane %v363_v42, 4  ;;  %vm265_vm15 = vcmp.lt.s32.totalorder %v1014_v17, 15  ;;  %v319_v33 = vand.u32 8, %v1002_v6 }
 0x225   :  { %vm1099_vm0 = vcmp.eq.s32.totalorder %v334_v40, 1  ;;  %vm1106_vm1 = vcmp.ne.s32.totalorder %v221_v48, 0 }
 0x226   :  { %v211_v56 = vpop.permute.xlu1 %210  ;;  %vm323_vm11 = vcmp.ne.s32.totalorder %v319_v33, 0 }
 0x227   :  { %v1047_v61 = vpop.permute.xlu0 %208  ;;  %v1083_v43 = vpop.permute.xlu2 %440 }
 0x228   :  { %v219_v62 = vsel %vm216_vm3, %v1047_v61, %v211_v56 }
 0x229   :  { %v242_v52 = vsel %vm238_vm4, %v219_v62, 0.0  ;;  %v320_v62 = vand.u32 8, %v989_v58 }
 0x22a   :  { %v250_v1 = vmul.f32 %v917_v13, %v242_v52 }
 0x22c   :  { %v1053_v2 = vadd.f32 %v250_v1, %v205_v29  ;;  %v366_v29 = vsel %vm362_vm7, 1, %v814_v0 }
 0x22d   :  { %v370_v38 = vperm.slane %v366_v29, 4  ;;  %v229_v29 = vsel %vm1106_vm1, 1, %v814_v0  ;;  %vm324_vm1 = vcmp.ne.s32.totalorder %v320_v62, 0 }
 0x22e   :  { %v213_v8 = vpop.permute.xlu1 %212  ;;  %v233_v48 = vperm.slane %v229_v29, 4 }
 0x22f   :  { %v217_v12 = vsel %vm216_vm3, %v213_v8, %v1016_v19  ;;  %v218_v11 = vsel %vm216_vm3, %v211_v56, %v213_v8  ;;  %v1061_v15 = vpop.permute.xlu0 %263  ;;  %vm1086_vm13 = vcmp.eq.s32.totalorder %v370_v38, 1  ;;  %v368_v56 = vperm.slane %v364_v41, 4  ;;  %v1144_v35 = vpop.permute.xlu2 %446 }
 0x230   :  { %v243_v18 = vsel %vm239_vm5, %v218_v11, 0.0  ;;  %v244_v20 = vsel %vm240_vm6, %v217_v12, 0.0  ;;  %v378_v52 = vsel %vm1086_vm13, %v940_v47, 0.0  ;;  %v407_v8 = vand.u32 32, %v1006_v14 }
 0x231   :  { %v251_v23 = vmul.f32 %v917_v13, %v243_v18  ;;  %v252_v24 = vmul.f32 %v917_v13, %v244_v20  ;;  %v271_v12 = vand.u32 4, %v989_v58  ;;  %v270_v11 = vand.u32 4, %v1002_v6 }
 0x232   :  { %vm1129_vm5 = vcmp.eq.s32.totalorder %v368_v56, 1  ;;  %vm1133_vm6 = vcmp.eq.s32.totalorder %v367_v3, 1  ;;  %vm411_vm7 = vcmp.ne.s32.totalorder %v407_v8, 0  ;;  %v272_v38 = vand.u32 4, %v1008_v9 }
 0x233   :  { %v1069_v25 = vadd.f32 %v251_v23, %v206_v51  ;;  %v256_v26 = vadd.f32 %v252_v24, %v207_v53  ;;  %v456_v51 = vand.u32 64, %v1006_v14  ;;  %v365_v53 = vsel %vm361_vm12, 1, %v814_v0 }
 0x234   :  { %v369_v20 = vperm.slane %v365_v53, 4  ;;  %v386_v24 = vmul.f32 %v1000_v5, %v378_v52  ;;  %vm275_vm8 = vcmp.ne.s32.totalorder %v271_v12, 0  ;;  %vm274_vm9 = vcmp.ne.s32.totalorder %v270_v11, 0 }
 0x235   :  { %vm460_vm4 = vcmp.ne.s32.totalorder %v456_v51, 0  ;;  %v376_v40 = vsel %vm1129_vm5, %v937_v46, 0.0  ;;  %v375_v42 = vsel %vm1133_vm6, %v934_v45, 0.0  ;;  %v415_v51 = vsel %vm411_vm7, 1, %v814_v0 }
 0x236   :  { %v1075_v31 = vpop.permute.xlu1 %257  ;;  %v464_v30 = vsel %vm460_vm4, 1, %v814_v0  ;;  %vm1147_vm10 = vcmp.eq.s32.totalorder %v369_v20, 1  ;;  %v279_v56 = vsel %vm275_vm8, 1, %v814_v0  ;;  %v278_v3 = vsel %vm274_vm9, 1, %v814_v0 }
 0x237   :  { %v1078_v34 = vpop.permute.xlu0 %306  ;;  %v468_v54 = vperm.slane %v464_v30, 4  ;;  %v377_v46 = vsel %vm1147_vm10, %v947_v50, 0.0  ;;  %vm276_vm12 = vcmp.ne.s32.totalorder %v272_v38, 0  ;;  %v321_v45 = vand.u32 8, %v1008_v9 }
 0x238   :  { %v1170_v52 = vmul.f32 %v1000_v5, %v375_v42  ;;  %v1173_v10 = vmul.f32 %v1000_v5, %v376_v40  ;;  %vm448_vm13 = vcmp.lt.s32.totalorder %v1014_v17, 113  ;;  %v327_v8 = vsel %vm323_vm11, 1, %v814_v0 }
 0x239   :  { %v1178_v50 = vmul.f32 %v1000_v5, %v377_v46  ;;  %vm325_vm4 = vcmp.ne.s32.totalorder %v321_v45, 0  ;;  %vm399_vm5 = vcmp.lt.s32.totalorder %v1014_v17, 127  ;;  %v452_v5 = vsel %vm448_vm13, %v1144_v35, %v1083_v43 }
 0x23a   :  { %v331_v20 = vperm.slane %v327_v8, 4  ;;  %v404_v23 = vand.u32 32, %v1002_v6  ;;  %v505_v38 = vand.u32 128, %v1006_v14  ;;  %v406_v40 = vand.u32 32, %v1008_v9 }
 0x23b   :  { %v454_v46 = vand.u32 64, %v989_v58  ;;  %v269_v8 = vsel %vm265_vm15, %v1061_v15, %v1075_v31  ;;  %v318_v29 = vsel %vm314_vm2, %v1045_v60, %v1078_v34 }
 0x23c   :  { %vm408_vm10 = vcmp.ne.s32.totalorder %v404_v23, 0  ;;  %vm1233_vm11 = vcmp.eq.s32.totalorder %v331_v20, 1 }
 0x23e   :  { %v1097_v59 = vpop.permute.xlu1 %261 }
 0x23f   :  { %v266_v63 = vsel %vm265_vm15, %v1097_v59, %v1061_v15  ;;  %v1115_v1 = vpop.permute.xlu0 %310  ;;  %v268_v15 = vsel %vm265_vm15, %v1075_v31, %v1026_v32 }
 0x240   :  { %v293_v4 = vsel %vm1092_vm14, %v266_v63, 0.0  ;;  %v315_v47 = vsel %vm314_vm2, %v1115_v1, %v1045_v60  ;;  %v419_v63 = vperm.slane %v415_v51, 4  ;;  %vm1180_vm14 = vcmp.eq.s32.totalorder %v233_v48, 1 }
 0x241   :  { %v301_v16 = vmul.f32 %v983_v55, %v293_v4  ;;  %v342_v18 = vsel %vm1099_vm0, %v315_v47, 0.0  ;;  %v283_v4 = vperm.slane %v279_v56, 4  ;;  %v282_v47 = vperm.slane %v278_v3, 4 }
 0x242   :  { %v350_v28 = vmul.f32 %v926_v36, %v342_v18  ;;  %vm1184_vm0 = vcmp.eq.s32.totalorder %v468_v54, 1  ;;  %v405_v18 = vand.u32 32, %v989_v58  ;;  %vm1198_vm6 = vcmp.eq.s32.totalorder %v419_v63, 1 }
 0x243   :  { %v305_v27 = vadd.f32 %v301_v16, %v256_v26  ;;  %v280_v16 = vsel %vm276_vm12, 1, %v814_v0  ;;  %vm1204_vm7 = vcmp.eq.s32.totalorder %v283_v4, 1  ;;  %vm1208_vm8 = vcmp.eq.s32.totalorder %v282_v47, 1 }
 0x244   :  { %v284_v30 = vperm.slane %v280_v16, 4  ;;  %v329_v26 = vsel %vm325_vm4, 1, %v814_v0  ;;  %v220_v48 = vsel %vm216_vm3, %v1016_v19, %v1047_v61  ;;  %v476_v51 = vsel %vm1184_vm0, %v452_v5, 0.0 }
 0x245   :  { %v354_v39 = vadd.f32 %v350_v28, %v305_v27  ;;  %v1202_v27 = vpop.permute.xlu2 %491  ;;  %vm409_vm9 = vcmp.ne.s32.totalorder %v405_v18, 0  ;;  %v455_v3 = vand.u32 64, %v1008_v9  ;;  %v333_v19 = vperm.slane %v329_v26, 4 }
 0x246   :  { %v1154_v41 = vpop.permute.xlu1 %308  ;;  %vm509_vm3 = vcmp.ne.s32.totalorder %v505_v38, 0  ;;  %v241_v61 = vsel %vm1180_vm14, %v220_v48, 0.0  ;;  %v484_v63 = vmul.f32 %v985_v57, %v476_v51  ;;  %vm1240_vm12 = vcmp.ne.s32.totalorder %v406_v40, 0 }
 0x247   :  { %v1159_v49 = vpop.permute.xlu0 %391  ;;  %v390_v53 = vadd.f32 %v386_v24, %v354_v39  ;;  %v328_v39 = vsel %vm324_vm1, 1, %v814_v0  ;;  %v413_v11 = vsel %vm409_vm9, 1, %v814_v0  ;;  %v412_v16 = vsel %vm408_vm10, 1, %v814_v0 }
 0x248   :  { %v332_v45 = vperm.slane %v328_v39, 4  ;;  %v453_v18 = vand.u32 64, %v1002_v6  ;;  %vm1251_vm0 = vcmp.eq.s32.totalorder %v284_v30, 1  ;;  %vm459_vm14 = vcmp.ne.s32.totalorder %v455_v3, 0 }
 0x249   :  { %vm458_vm1 = vcmp.ne.s32.totalorder %v454_v46, 0  ;;  %v249_v23 = vmul.f32 %v917_v13, %v241_v61  ;;  %v290_v38 = vsel %vm1208_vm8, %v269_v8, 0.0  ;;  %v417_v39 = vperm.slane %v413_v11, 4 }
 0x24a   :  { %vm1263_vm4 = vcmp.eq.s32.totalorder %v332_v45, 1  ;;  %v416_v26 = vperm.slane %v412_v16, 4  ;;  %v414_v13 = vsel %vm1240_vm12, 1, %v814_v0  ;;  %v463_v31 = vsel %vm459_vm14, 1, %v814_v0 }
 0x24b   :  { %vm457_vm9 = vcmp.ne.s32.totalorder %v453_v18, 0  ;;  %v291_v51 = vsel %vm1204_vm7, %v268_v15, 0.0  ;;  %v253_v3 = vadd.f32 %v249_v23, %v1038_v44  ;;  %v298_v46 = vmul.f32 %v983_v55, %v290_v38 }
 0x24c   :  { %v418_v45 = vperm.slane %v414_v13, 4  ;;  %v467_v61 = vperm.slane %v463_v31, 4  ;;  %v461_v28 = vsel %vm457_vm9, 1, %v814_v0  ;;  %vm497_vm7 = vcmp.lt.s32.totalorder %v1014_v17, 112 }
 0x24d   :  { %v1276_v40 = vpop.permute.xlu2 %495  ;;  %v299_v4 = vmul.f32 %v983_v55, %v291_v51  ;;  %v339_v60 = vsel %vm1233_vm11, %v318_v29, 0.0  ;;  %v317_v44 = vsel %vm314_vm2, %v1078_v34, %v1154_v41  ;;  %v267_v8 = vsel %vm265_vm15, %v1026_v32, %v1097_v59 }
 0x24e   :  { %v1195_v21 = vpop.permute.xlu1 %393  ;;  %vm1308_vm10 = vcmp.eq.s32.totalorder %v417_v39, 1  ;;  %v554_v34 = vand.u32 256, %v1006_v14  ;;  %v302_v18 = vadd.f32 %v298_v46, %v253_v3  ;;  %v316_v32 = vsel %vm314_vm2, %v1154_v41, %v1115_v1 }
 0x24f   :  { %v1212_v33 = vpop.permute.xlu0 %397  ;;  %v340_v23 = vsel %vm1263_vm4, %v317_v44, 0.0  ;;  %v551_v15 = vand.u32 256, %v1002_v6  ;;  %v292_v38 = vsel %vm1251_vm0, %v267_v8, 0.0  ;;  %vm1340_vm2 = vcmp.eq.s32.totalorder %v418_v45, 1 }
 0x250   :  { %v403_v42 = vsel %vm399_vm5, %v1212_v33, %v1159_v49  ;;  %vm558_vm14 = vcmp.ne.s32.totalorder %v554_v34, 0  ;;  %v348_v12 = vmul.f32 %v926_v36, %v340_v23  ;;  %v300_v51 = vmul.f32 %v983_v55, %v292_v38 }
 0x251   :  { %v427_v54 = vsel %vm1198_vm6, %v403_v42, 0.0  ;;  %vm1267_vm6 = vcmp.eq.s32.totalorder %v333_v19, 1  ;;  %v462_v42 = vsel %vm458_vm1, 1, %v814_v0  ;;  %v504_v19 = vand.u32 128, %v1008_v9 }
 0x252   :  { %v435_v56 = vmul.f32 %v928_v37, %v427_v54  ;;  %v502_v54 = vand.u32 128, %v1002_v6  ;;  %vm555_vm1 = vcmp.ne.s32.totalorder %v551_v15, 0  ;;  %vm1357_vm4 = vcmp.eq.s32.totalorder %v467_v61, 1 }
 0x253   :  { %vm508_vm15 = vcmp.ne.s32.totalorder %v504_v19, 0  ;;  %v401_v55 = vsel %vm399_vm5, %v1195_v21, %v1065_v22  ;;  %v402_v19 = vsel %vm399_vm5, %v1159_v49, %v1195_v21  ;;  %v553_v44 = vand.u32 256, %v1008_v9 }
 0x254   :  { %v439_v47 = vadd.f32 %v435_v56, %v390_v53  ;;  %v513_v53 = vsel %vm509_vm3, 1, %v814_v0  ;;  %v503_v56 = vand.u32 128, %v989_v58  ;;  %vm1312_vm3 = vcmp.eq.s32.totalorder %v416_v26, 1 }
 0x255   :  { %v517_v48 = vperm.slane %v513_v53, 4  ;;  %vm506_vm11 = vcmp.ne.s32.totalorder %v502_v54, 0  ;;  %v347_v53 = vmul.f32 %v926_v36, %v339_v60  ;;  %v341_v26 = vsel %vm1267_vm6, %v316_v32, 0.0  ;;  %v1345_v31 = vpop.permute.xlu2 %540 }
 0x256   :  { %v1255_v5 = vpop.permute.xlu1 %444  ;;  %v488_v20 = vadd.f32 %v484_v63, %v439_v47  ;;  %v466_v63 = vperm.slane %v462_v42, 4  ;;  %vm507_vm12 = vcmp.ne.s32.totalorder %v503_v56, 0  ;;  %v510_v1 = vsel %vm506_vm11, 1, %v814_v0 }
 0x257   :  { %vm1300_vm8 = vcmp.eq.s32.totalorder %v517_v48, 1  ;;  %v511_v39 = vsel %vm507_vm12, 1, %v814_v0  ;;  %v512_v13 = vsel %vm508_vm15, 1, %v814_v0  ;;  %v351_v6 = vadd.f32 %v347_v53, %v302_v18 }
 0x258   :  { %v465_v42 = vperm.slane %v461_v28, 4  ;;  %vm1351_vm0 = vcmp.eq.s32.totalorder %v466_v63, 1  ;;  %v514_v29 = vperm.slane %v510_v1, 4  ;;  %v515_v54 = vperm.slane %v511_v39, 4 }
 0x259   :  { %v303_v56 = vadd.f32 %v299_v4, %v1053_v2  ;;  %v349_v3 = vmul.f32 %v926_v36, %v341_v26  ;;  %v516_v45 = vperm.slane %v512_v13, 4  ;;  %v400_v36 = vsel %vm399_vm5, %v1065_v22, %v1212_v33  ;;  %v443_v2 = vpop.permute.xlu0 %442 }
 0x25a   :  { %v552_v63 = vand.u32 256, %v989_v58  ;;  %vm1375_vm6 = vcmp.eq.s32.totalorder %v465_v42, 1  ;;  %v559_v60 = vsel %vm555_vm1, 1, %v814_v0  ;;  %v304_v49 = vadd.f32 %v300_v51, %v1069_v25 }
 0x25b   :  { %v352_v28 = vadd.f32 %v348_v12, %v303_v56  ;;  %v387_v21 = vadd.f32 %v1170_v52, %v351_v6  ;;  %vm1383_vm9 = vcmp.eq.s32.totalorder %v514_v29, 1  ;;  %vm1387_vm5 = vcmp.eq.s32.totalorder %v515_v54, 1 }
 0x25c   :  { %v424_v58 = vsel %vm1312_vm3, %v402_v19, 0.0  ;;  %v425_v33 = vsel %vm1308_vm10, %v401_v55, 0.0  ;;  %v426_v9 = vsel %vm1340_vm2, %v400_v36, 0.0  ;;  %v353_v8 = vadd.f32 %v349_v3, %v304_v49 }
 0x25d   :  { %v563_v34 = vperm.slane %v559_v60, 4  ;;  %vm556_vm11 = vcmp.ne.s32.totalorder %v552_v63, 0  ;;  %v388_v18 = vadd.f32 %v1173_v10, %v352_v28  ;;  %v451_v62 = vsel %vm448_vm13, %v1083_v43, %v443_v2  ;;  %v545_v23 = vpop.permute.xlu2 %544 }
 0x25e   :  { %v1316_v16 = vpop.permute.xlu1 %489  ;;  %vm546_vm3 = vcmp.lt.s32.totalorder %v1014_v17, 111  ;;  %vm557_vm10 = vcmp.ne.s32.totalorder %v553_v44, 0  ;;  %v432_v11 = vmul.f32 %v928_v37, %v424_v58  ;;  %v433_v32 = vmul.f32 %v928_v37, %v425_v33 }
 0x25f   :  { %v501_v59 = vsel %vm497_vm7, %v1276_v40, %v1316_v16  ;;  %v450_v53 = vsel %vm448_vm13, %v443_v2, %v1255_v5  ;;  %v449_v10 = vsel %vm448_vm13, %v1255_v5, %v1144_v35  ;;  %v500_v43 = vsel %vm497_vm7, %v1316_v16, %v1202_v27 }
 0x260   :  { %v525_v14 = vsel %vm1300_vm8, %v501_v59, 0.0  ;;  %vm1397_vm8 = vcmp.eq.s32.totalorder %v516_v45, 1  ;;  %v434_v59 = vmul.f32 %v928_v37, %v426_v9  ;;  %v560_v37 = vsel %vm556_vm11, 1, %v814_v0 }
 0x261   :  { %v533_v41 = vmul.f32 %v1004_v7, %v525_v14  ;;  %v473_v15 = vsel %vm1375_vm6, %v451_v62, 0.0  ;;  %vm1430_vm13 = vcmp.eq.s32.totalorder %v563_v34, 1  ;;  %v577_v5 = vpop.permute.xlu0 %576  ;;  %v561_v16 = vsel %vm557_vm10, 1, %v814_v0 }
 0x262   :  { %v475_v24 = vsel %vm1357_vm4, %v449_v10, 0.0  ;;  %v564_v6 = vperm.slane %v560_v37, 4  ;;  %v481_v12 = vmul.f32 %v985_v57, %v473_v15  ;;  %v565_v51 = vperm.slane %v561_v16, 4 }
 0x263   :  { %v1348_v48 = vadd.f32 %v533_v41, %v488_v20  ;;  %v562_v20 = vsel %vm558_vm14, 1, %v814_v0  ;;  %v474_v41 = vsel %vm1351_vm0, %v450_v53, 0.0  ;;  %v522_v0 = vsel %vm1383_vm9, %v500_v43, 0.0 }
 0x264   :  { %v566_v25 = vperm.slane %v562_v20, 4  ;;  %v389_v30 = vadd.f32 %v1178_v50, %v353_v8  ;;  %v482_v29 = vmul.f32 %v985_v57, %v474_v41  ;;  %v436_v3 = vadd.f32 %v432_v11, %v387_v21 }
 0x265   :  { %v483_v46 = vmul.f32 %v985_v57, %v475_v24  ;;  %v530_v45 = vmul.f32 %v1004_v7, %v522_v0  ;;  %v437_v55 = vadd.f32 %v433_v32, %v388_v18  ;;  %vm569_vm15 = vcmp.eq.s32.totalorder %v565_v51, 1 }
 0x266   :  { %v494_v61 = vpop.permute.xlu1 %493  ;;  %vm1420_vm12 = vcmp.eq.s32.totalorder %v566_v25, 1  ;;  %v438_v19 = vadd.f32 %v434_v59, %v389_v30  ;;  %v485_v2 = vadd.f32 %v481_v12, %v436_v3  ;;  %v837_v53 = vmov 15  }
 0x267   :  { %v499_v38 = vsel %vm497_vm7, %v1202_v27, %v494_v61  ;;  %v498_v39 = vsel %vm497_vm7, %v494_v61, %v1276_v40  ;;  %vm1466_vm7 = vcmp.eq.s32.totalorder %v564_v6, 1  ;;  %v486_v28 = vadd.f32 %v482_v29, %v437_v55  ;;  %727 = vset.pattern.permute.xlu0 %v837_v53 }
 0x268   :  { %v523_v40 = vsel %vm1387_vm5, %v499_v38, 0.0  ;;  %v524_v54 = vsel %vm1397_vm8, %v498_v39, 0.0  ;;  %v487_v4 = vadd.f32 %v483_v46, %v438_v19  ;;  %v534_v60 = vadd.f32 %v530_v45, %v485_v2 }
 0x269   :  { %v531_v50 = vmul.f32 %v1004_v7, %v523_v40  ;;  %v532_v61 = vmul.f32 %v1004_v7, %v524_v54  ;;  %v838_v0 = vmov 16  }
 0x26b   :  { %v535_v49 = vadd.f32 %v531_v50, %v486_v28  ;;  %v536_v22 = vadd.f32 %v532_v61, %v487_v4 }
 0x26e   :  { %v539_v1 = vpop.permute.xlu1 %538 }
 0x26f   :  { %v549_v26 = vsel %vm546_vm3, %v539_v1, %v1345_v31  ;;  %v550_v27 = vsel %vm546_vm3, %v545_v23, %v539_v1 }
 0x270   :  { %v574_v13 = vsel %vm1420_vm12, %v550_v27, 0.0  ;;  %v571_v56 = vsel %vm1430_vm13, %v549_v26, 0.0  ;;  %v733_v27 = vld [vmem:[#allocation5] sm:$0xff] }
 0x271   :  { %v582_v42 = vmul.f32 %v577_v5, %v574_v13  ;;  %v579_v63 = vmul.f32 %v577_v5, %v571_v56 }
 0x273   :  { %v1463_v20 = vadd.f32 %v582_v42, %v1348_v48  ;;  %v583_v7 = vadd.f32 %v579_v63, %v534_v60 }
 0x275   :  { %v593_v52 = vmul.f32 %v583_v7, %v583_v7 }
 0x276   :  { %v543_v57 = vpop.permute.xlu1 %542 }
 0x277   :  { %v547_v48 = vsel %vm546_vm3, %v543_v57, %v545_v23  ;;  %v548_v44 = vsel %vm546_vm3, %v1345_v31, %v543_v57  ;;  %v596_v31 = vmul.f32 %v1463_v20, %v1463_v20 }
 0x278   :  { %v572_v21 = vsel %vm1466_vm7, %v548_v44, 0.0  ;;  %v573_v47 = vsel %vm569_vm15, %v547_v48, 0.0 }
 0x279   :  { %v580_v58 = vmul.f32 %v577_v5, %v572_v21  ;;  %v581_v33 = vmul.f32 %v577_v5, %v573_v47 }
 0x27b   :  { %v584_v9 = vadd.f32 %v580_v58, %v535_v49  ;;  %v585_v25 = vadd.f32 %v581_v33, %v536_v22 }
 0x27d   :  { %v587_v8 = vadd.f32 %v584_v9, %v583_v7  ;;  %v594_v34 = vmul.f32 %v584_v9, %v584_v9  ;;  %v595_v62 = vmul.f32 %v585_v25, %v585_v25 }
 0x27f   :  { %v588_v18 = vadd.f32 %v587_v8, %v585_v25  ;;  %v597_v11 = vadd.f32 %v594_v34, %v593_v52 }
 0x281   :  { %v589_v17 = vadd.f32 %v588_v18, %v1463_v20  ;;  %v598_v32 = vadd.f32 %v597_v11, %v595_v62 }
 0x283   :  { %590 = vadd.xlane.f32.xlu1 %v589_v17  ;;  %v599_v59 = vadd.f32 %v598_v32, %v596_v31 }
 0x285   :  { %600 = vadd.xlane.f32.xlu2 %v599_v59 }
 0x2f6   :  { %v591_v23 = vpop.xlane.xlu1 %590 }
 0x2f7   :  { %v592_v10 = vmul.f32 0.001953125, %v591_v23 }
 0x2f8   :  { %v601_v43 = vpop.xlane.xlu2 %600 }
 0x2f9   :  { %v602_v14 = vmul.f32 0.001953125, %v601_v43  ;;  %v603_v37 = vmul.f32 %v592_v10, %v592_v10  ;;  %v617_v6 = vsub.f32 %v583_v7, %v592_v10  ;;  %v618_v12 = vsub.f32 %v584_v9, %v592_v10 }
 0x2fa   :  { %v619_v40 = vsub.f32 %v585_v25, %v592_v10  ;;  %v620_v42 = vsub.f32 %v1463_v20, %v592_v10 }
 0x2fb   :  { %v604_v15 = vsub.f32 %v602_v14, %v603_v37 }
 0x2fd   :  { %v605_v38 = vadd.f32 1e-05, %v604_v15 }
 0x2ff   :  { %731 = vrsqrt.f32 %v605_v38  ;;  %vm612_vm14 = vweird.f32 %v605_v38 }
 0x305   :  { %v732_v1 = vpop.eup %731 }
 0x306   :  { %v607_v35 = vmul.f32 %v732_v1, %v605_v38  ;;  %vm613_vm2 = vweird.f32 %v732_v1 }
 0x307   :  { %vm614_vm0 = vmor %vm612_vm14, %vm613_vm2 }
 0x308   :  { %v608_v5 = vmul.f32 %v732_v1, %v607_v35 }
 0x30a   :  { %v609_v16 = vmul.f32 0.5, %v608_v5 }
 0x30c   :  { %v610_v41 = vsub.f32 1.5, %v609_v16 }
 0x30e   :  { %v611_v39 = vmul.f32 %v732_v1, %v610_v41 }
 0x310   :  { %v615_v26 = vsel %vm614_vm0, %v732_v1, %v611_v39 }
 0x311   :  { %v616_v24 = vmul.f32 %v733_v27, %v615_v26 }
 0x313   :  { %623 = vperm.xlu0 %727, %v616_v24  }
 0x31b   :  { %728 = vset.pattern.permute.xlu0 %v838_v0 }
 0x31c   :  { %631 = vperm.xlu0 %728, %v733_v27  }
 0x385   :  { %v624_v13 = vpop.permute.xlu0 %623 }
 0x386   :  { %v626_v51 = vmul.f32 %v624_v13, %v617_v6  ;;  %v627_v30 = vmul.f32 %v624_v13, %v618_v12  ;;  %v628_v29 = vmul.f32 %v624_v13, %v619_v40  ;;  %v629_v54 = vmul.f32 %v624_v13, %v620_v42 }
 0x38e   :  { %v632_v56 = vpop.permute.xlu0 %631 }
 0x38f   :  { %v634_v3 = vadd.f32 %v632_v56, %v626_v51  ;;  %v635_v46 = vadd.f32 %v632_v56, %v627_v30  ;;  %v636_v45 = vadd.f32 %v632_v56, %v628_v29  ;;  %v637_v55 = vadd.f32 %v632_v56, %v629_v54 }
 0x391   :  { %v638_v19 = vmax.f32 %v634_v3, 0.0  ;;  %v639_v50 = vmax.f32 %v635_v46, 0.0  ;;  %v640_v36 = vmax.f32 %v636_v45, 0.0  ;;  %v641_v2 = vmax.f32 %v637_v55, 0.0 }
 0x393   :  { %642 = vst [vmem:[#allocation7] sm:$0xff] %v638_v19 }
 0x394   :  { %643 = vst [vmem:[#allocation7 + $0x8] sm:$0xff] %v639_v50 }
 0x395   :  { %644 = vst [vmem:[#allocation7 + $0x10] sm:$0xff] %v640_v36 }
 0x396   :  { %645 = vst [vmem:[#allocation7 + $0x18] sm:$0xff] %v641_v2 }
 0x397   :  { %656 = dma.vmem_to_hbm [thread:$0]  %s652_s26, 512, %s654_s29, [#allocation4]  }
 0x398   :  { %810 = dma.done.wait [#allocation4], 512  }
 0x399   :  { %811 = vsyncadd [#allocation4], 4294966784 }
 0x39a   :  { %661 = vsyncpa [#allocation3], 1 }
 0x39b   :  { %662 = vsyncpa [#allocation6], 1 }
 0x39c   :  { %663 = vsyncpa [#allocation4], 1 }

</bundles_post_ra>
